<compile_context>
chip_gen: v5e
topology: v5e:2x2
jax: 0.10.0
libtpu: 0.0.40
codegen_flags: <defaults>
</compile_context>

<pallas_src>
import jax
import jax.numpy as jnp
from jax.experimental import pallas as pl
from jax.experimental.pallas import tpu as pltpu

# ---- problem sizes (lane-dense, MXU-shaped) ----
NODES_PER_GRAPH = 16                       # fixed-size graphs, contiguous nodes
GRAPHS_PER_BLOCK = 8                       # graphs handled per grid step
NUM_BLOCKS = 2                             # grid size
B = GRAPHS_PER_BLOCK * NUM_BLOCKS          # 16 graphs total
TN = GRAPHS_PER_BLOCK * NODES_PER_GRAPH    # 128 node rows per grid step
N = TN * NUM_BLOCKS                        # 256 nodes total
F = 128                                    # input node-feature dim
HID = 128                                  # encoder hidden dim per layer
Z_G_DIM = 2 * HID                          # graph-embedding dim (concat of 2 layers)
Z_N_DIM = 128                              # fc output dim


def infog_enc_kernel(x_ref, p_ref, w1_ref, b1_ref, w2_ref, b2_ref,
                     wfa_ref, wfb_ref, bfc_ref, out_ref):
    # Encoder layer 1: bf16 MXU matmul, f32 accumulate; bias add + ReLU in f32.
    h1 = jnp.dot(x_ref[...], w1_ref[...], preferred_element_type=jnp.float32)
    h1 = jnp.maximum(h1 + b1_ref[...], 0.0)
    h1_bf = h1.astype(jnp.bfloat16)
    # Encoder layer 2.
    h2 = jnp.dot(h1_bf, w2_ref[...], preferred_element_type=jnp.float32)
    h2 = jnp.maximum(h2 + b2_ref[...], 0.0)
    h2_bf = h2.astype(jnp.bfloat16)
    # Per-graph sum pooling as an MXU matmul with block-diagonal P [GB, TN].
    zg1 = jnp.dot(p_ref[...], h1_bf, preferred_element_type=jnp.float32)  # [GB, HID]
    zg2 = jnp.dot(p_ref[...], h2_bf, preferred_element_type=jnp.float32)  # [GB, HID]
    # fc(concat([zg1, zg2])) == zg1 @ Wfc[:HID] + zg2 @ Wfc[HID:] + bfc
    out = (jnp.dot(zg1.astype(jnp.bfloat16), wfa_ref[...],
                   preferred_element_type=jnp.float32)
           + jnp.dot(zg2.astype(jnp.bfloat16), wfb_ref[...],
                     preferred_element_type=jnp.float32)
           + bfc_ref[...])
    out_ref[...] = out.astype(out_ref.dtype)


def _full_spec(arr):
    # whole array resident for every grid step
    return pl.BlockSpec(arr.shape, lambda i: (0,) * arr.ndim)


def infog_enc_forward(x, p, w1, b1, w2, b2, wfc, bfc):
    # Algebraic split of the fc weight (stored as [in, out]) — zero-cost slices.
    wfc_a = wfc[:HID]     # multiplies pool(h1)
    wfc_b = wfc[HID:]     # multiplies pool(h2)
    return pl.pallas_call(
        infog_enc_kernel,
        out_shape=jax.ShapeDtypeStruct((B, Z_N_DIM), jnp.float32),
        grid=(NUM_BLOCKS,),
        in_specs=[
            pl.BlockSpec((TN, F), lambda i: (i, 0)),   # x node-block [128, 128]
            _full_spec(p),                              # pooling matrix [8, 128]
            _full_spec(w1), _full_spec(b1),
            _full_spec(w2), _full_spec(b2),
            _full_spec(wfc_a), _full_spec(wfc_b), _full_spec(bfc),
        ],
        out_specs=pl.BlockSpec((GRAPHS_PER_BLOCK, Z_N_DIM), lambda i: (i, 0)),
        compiler_params=pltpu.CompilerParams(
            dimension_semantics=("parallel",),
            vmem_limit_bytes=64 << 20),
    )(x, p, wfc_a, wfc_b, bfc) if False else pl.pallas_call(
        infog_enc_kernel,
        out_shape=jax.ShapeDtypeStruct((B, Z_N_DIM), jnp.float32),
        grid=(NUM_BLOCKS,),
        in_specs=[
            pl.BlockSpec((TN, F), lambda i: (i, 0)),
            _full_spec(p),
            _full_spec(w1), _full_spec(b1),
            _full_spec(w2), _full_spec(b2),
            _full_spec(wfc_a), _full_spec(wfc_b), _full_spec(bfc),
        ],
        out_specs=pl.BlockSpec((GRAPHS_PER_BLOCK, Z_N_DIM), lambda i: (i, 0)),
        compiler_params=pltpu.CompilerParams(
            dimension_semantics=("parallel",),
            vmem_limit_bytes=64 << 20),
    )(x, p, w1, b1, w2, b2, wfc_a, wfc_b, bfc)


def make_pool_matrix():
    # Block-diagonal ones: P[g, n] = 1 iff node n belongs to graph g (within a block).
    rows = jnp.arange(GRAPHS_PER_BLOCK)[:, None]
    cols = jnp.arange(TN)[None, :] // NODES_PER_GRAPH
    return (rows == cols).astype(jnp.bfloat16)            # [8, 128]


def init_params(key):
    ks = jax.random.split(key, 6)
    scale = 0.1
    w1 = (scale * jax.random.normal(ks[0], (F, HID), jnp.float32)).astype(jnp.bfloat16)
    b1 = scale * jax.random.normal(ks[1], (1, HID), jnp.float32)
    w2 = (scale * jax.random.normal(ks[2], (HID, HID), jnp.float32)).astype(jnp.bfloat16)
    b2 = scale * jax.random.normal(ks[3], (1, HID), jnp.float32)
    wfc = (scale * jax.random.normal(ks[4], (Z_G_DIM, Z_N_DIM), jnp.float32)).astype(jnp.bfloat16)
    bfc = scale * jax.random.normal(ks[5], (1, Z_N_DIM), jnp.float32)
    return w1, b1, w2, b2, wfc, bfc


def reference_forward(x, w1, b1, w2, b2, wfc, bfc):
    # Original module math (concat readout + reshape sum-pool + single fc),
    # with the kernel's bf16-operand / f32-accumulate precision mirrored.
    h1 = jnp.maximum(jnp.dot(x, w1, preferred_element_type=jnp.float32) + b1, 0.0)
    h1_bf = h1.astype(jnp.bfloat16)
    h2 = jnp.maximum(jnp.dot(h1_bf, w2, preferred_element_type=jnp.float32) + b2, 0.0)
    h2_bf = h2.astype(jnp.bfloat16)
    zn = jnp.concatenate([h1_bf, h2_bf], axis=-1)                       # [N, Z_G_DIM]
    zg = jnp.sum(zn.reshape(B, NODES_PER_GRAPH, Z_G_DIM).astype(jnp.float32), axis=1)
    return jnp.dot(zg.astype(jnp.bfloat16), wfc,
                   preferred_element_type=jnp.float32) + bfc


if __name__ == "__main__":
    key = jax.random.PRNGKey(0)
    kx, kp = jax.random.split(key)
    # node features (graphs are contiguous blocks of NODES_PER_GRAPH rows)
    x = jax.random.normal(kx, (N, F), jnp.float32).astype(jnp.bfloat16)
    params = init_params(kp)
    p = make_pool_matrix()

    out = infog_enc_forward(x, p, *params)
    out = jax.block_until_ready(out)

    ref = reference_forward(x, *params)
    assert out.shape == (B, Z_N_DIM)
    assert jnp.allclose(out, ref, atol=1e-2, rtol=1e-2), "mismatch vs pure-JAX reference"
    print("KERNEL_OK")
</pallas_src>

<mosaic_0001>
module attributes {stable_mosaic.version = 11 : i64} {
  func.func @infog_enc_kernel(%arg0: i32, %arg1: memref<128x128xbf16, #tpu.memory_space<vmem>>, %arg2: memref<8x128xbf16, #tpu.memory_space<vmem>>, %arg3: memref<128x128xbf16, #tpu.memory_space<vmem>>, %arg4: memref<1x128xf32, #tpu.memory_space<vmem>>, %arg5: memref<128x128xbf16, #tpu.memory_space<vmem>>, %arg6: memref<1x128xf32, #tpu.memory_space<vmem>>, %arg7: memref<128x128xbf16, #tpu.memory_space<vmem>>, %arg8: memref<128x128xbf16, #tpu.memory_space<vmem>>, %arg9: memref<1x128xf32, #tpu.memory_space<vmem>>, %arg10: memref<8x128xf32, #tpu.memory_space<vmem>>) attributes {dimension_semantics = [#tpu.dimension_semantics<parallel>], iteration_bounds = array<i64: 2>, scalar_prefetch = 0 : i64, scratch_operands = 0 : i64, tpu.core_type = #tpu.core_type<tc>, window_params = [{transform_indices = @transform_0, window_bounds = array<i64: 128, 128>}, {pipeline_mode = #tpu.pipeline_mode<synchronous>, transform_indices = @transform_1, window_bounds = array<i64: 8, 128>}, {pipeline_mode = #tpu.pipeline_mode<synchronous>, transform_indices = @transform_2, window_bounds = array<i64: 128, 128>}, {pipeline_mode = #tpu.pipeline_mode<synchronous>, transform_indices = @transform_3, window_bounds = array<i64: 1, 128>}, {pipeline_mode = #tpu.pipeline_mode<synchronous>, transform_indices = @transform_4, window_bounds = array<i64: 128, 128>}, {pipeline_mode = #tpu.pipeline_mode<synchronous>, transform_indices = @transform_5, window_bounds = array<i64: 1, 128>}, {pipeline_mode = #tpu.pipeline_mode<synchronous>, transform_indices = @transform_6, window_bounds = array<i64: 128, 128>}, {pipeline_mode = #tpu.pipeline_mode<synchronous>, transform_indices = @transform_7, window_bounds = array<i64: 128, 128>}, {pipeline_mode = #tpu.pipeline_mode<synchronous>, transform_indices = @transform_8, window_bounds = array<i64: 1, 128>}, {transform_indices = @transform_9, window_bounds = array<i64: 8, 128>}]} {
    %c0 = arith.constant 0 : index
    %c0_0 = arith.constant 0 : index
    %0 = vector.load %arg1[%c0, %c0_0] : memref<128x128xbf16, #tpu.memory_space<vmem>>, vector<128x128xbf16>
    %c0_1 = arith.constant 0 : index
    %c0_2 = arith.constant 0 : index
    %1 = vector.load %arg3[%c0_1, %c0_2] : memref<128x128xbf16, #tpu.memory_space<vmem>>, vector<128x128xbf16>
    %cst = arith.constant dense<0.000000e+00> : vector<128x128xf32>
    %2 = tpu.matmul %0, %1, %cst {dimension_numbers = #tpu.dot_dimension_numbers<[1], [0], [0], [1], [0, 0, 1, 1], [], []>} : vector<128x128xbf16>, vector<128x128xbf16>, vector<128x128xf32> -> vector<128x128xf32>
    %c0_3 = arith.constant 0 : index
    %c0_4 = arith.constant 0 : index
    %3 = vector.load %arg4[%c0_3, %c0_4] : memref<1x128xf32, #tpu.memory_space<vmem>>, vector<1x128xf32>
    %4 = vector.broadcast %3 : vector<1x128xf32> to vector<128x128xf32>
    %5 = arith.addf %2, %4 : vector<128x128xf32>
    %cst_5 = arith.constant 0.000000e+00 : f32
    %6 = vector.broadcast %cst_5 : f32 to vector<128x128xf32>
    %7 = arith.maximumf %5, %6 : vector<128x128xf32>
    %8 = arith.truncf %7 : vector<128x128xf32> to vector<128x128xbf16>
    %c0_6 = arith.constant 0 : index
    %c0_7 = arith.constant 0 : index
    %9 = vector.load %arg5[%c0_6, %c0_7] : memref<128x128xbf16, #tpu.memory_space<vmem>>, vector<128x128xbf16>
    %cst_8 = arith.constant dense<0.000000e+00> : vector<128x128xf32>
    %10 = tpu.matmul %8, %9, %cst_8 {dimension_numbers = #tpu.dot_dimension_numbers<[1], [0], [0], [1], [0, 0, 1, 1], [], []>} : vector<128x128xbf16>, vector<128x128xbf16>, vector<128x128xf32> -> vector<128x128xf32>
    %c0_9 = arith.constant 0 : index
    %c0_10 = arith.constant 0 : index
    %11 = vector.load %arg6[%c0_9, %c0_10] : memref<1x128xf32, #tpu.memory_space<vmem>>, vector<1x128xf32>
    %12 = vector.broadcast %11 : vector<1x128xf32> to vector<128x128xf32>
    %13 = arith.addf %10, %12 : vector<128x128xf32>
    %cst_11 = arith.constant 0.000000e+00 : f32
    %14 = vector.broadcast %cst_11 : f32 to vector<128x128xf32>
    %15 = arith.maximumf %13, %14 : vector<128x128xf32>
    %16 = arith.truncf %15 : vector<128x128xf32> to vector<128x128xbf16>
    %c0_12 = arith.constant 0 : index
    %c0_13 = arith.constant 0 : index
    %17 = vector.load %arg2[%c0_12, %c0_13] : memref<8x128xbf16, #tpu.memory_space<vmem>>, vector<8x128xbf16>
    %cst_14 = arith.constant dense<0.000000e+00> : vector<8x128xf32>
    %18 = tpu.matmul %17, %8, %cst_14 {dimension_numbers = #tpu.dot_dimension_numbers<[1], [0], [0], [1], [0, 0, 1, 1], [], []>} : vector<8x128xbf16>, vector<128x128xbf16>, vector<8x128xf32> -> vector<8x128xf32>
    %c0_15 = arith.constant 0 : index
    %c0_16 = arith.constant 0 : index
    %19 = vector.load %arg2[%c0_15, %c0_16] : memref<8x128xbf16, #tpu.memory_space<vmem>>, vector<8x128xbf16>
    %cst_17 = arith.constant dense<0.000000e+00> : vector<8x128xf32>
    %20 = tpu.matmul %19, %16, %cst_17 {dimension_numbers = #tpu.dot_dimension_numbers<[1], [0], [0], [1], [0, 0, 1, 1], [], []>} : vector<8x128xbf16>, vector<128x128xbf16>, vector<8x128xf32> -> vector<8x128xf32>
    %21 = arith.truncf %18 : vector<8x128xf32> to vector<8x128xbf16>
    %c0_18 = arith.constant 0 : index
    %c0_19 = arith.constant 0 : index
    %22 = vector.load %arg7[%c0_18, %c0_19] : memref<128x128xbf16, #tpu.memory_space<vmem>>, vector<128x128xbf16>
    %cst_20 = arith.constant dense<0.000000e+00> : vector<8x128xf32>
    %23 = tpu.matmul %21, %22, %cst_20 {dimension_numbers = #tpu.dot_dimension_numbers<[1], [0], [0], [1], [0, 0, 1, 1], [], []>} : vector<8x128xbf16>, vector<128x128xbf16>, vector<8x128xf32> -> vector<8x128xf32>
    %24 = arith.truncf %20 : vector<8x128xf32> to vector<8x128xbf16>
    %c0_21 = arith.constant 0 : index
    %c0_22 = arith.constant 0 : index
    %25 = vector.load %arg8[%c0_21, %c0_22] : memref<128x128xbf16, #tpu.memory_space<vmem>>, vector<128x128xbf16>
    %cst_23 = arith.constant dense<0.000000e+00> : vector<8x128xf32>
    %26 = tpu.matmul %24, %25, %cst_23 {dimension_numbers = #tpu.dot_dimension_numbers<[1], [0], [0], [1], [0, 0, 1, 1], [], []>} : vector<8x128xbf16>, vector<128x128xbf16>, vector<8x128xf32> -> vector<8x128xf32>
    %27 = arith.addf %23, %26 : vector<8x128xf32>
    %c0_24 = arith.constant 0 : index
    %c0_25 = arith.constant 0 : index
    %28 = vector.load %arg9[%c0_24, %c0_25] : memref<1x128xf32, #tpu.memory_space<vmem>>, vector<1x128xf32>
    %29 = vector.broadcast %28 : vector<1x128xf32> to vector<8x128xf32>
    %30 = arith.addf %27, %29 : vector<8x128xf32>
    %c0_26 = arith.constant 0 : index
    %c0_27 = arith.constant 0 : index
    %31 = vector.load %arg10[%c0_26, %c0_27] : memref<8x128xf32, #tpu.memory_space<vmem>>, vector<8x128xf32>
    tpu.vector_store %arg10[%c0_26, %c0_27], %30 {strides = array<i32>} : memref<8x128xf32, #tpu.memory_space<vmem>>, vector<8x128xf32>,
    return
  }
  func.func @transform_0(%arg0: i32) -> (i32, i32) {
    %c0_i32 = arith.constant 0 : i32
    %c0_i32_0 = arith.constant 0 : i32
    return %arg0, %c0_i32 : i32, i32
  }
  func.func @transform_1(%arg0: i32) -> (i32, i32) {
    %c0_i32 = arith.constant 0 : i32
    %c0_i32_0 = arith.constant 0 : i32
    %c0_i32_1 = arith.constant 0 : i32
    return %c0_i32, %c0_i32_0 : i32, i32
  }
  func.func @transform_2(%arg0: i32) -> (i32, i32) {
    %c0_i32 = arith.constant 0 : i32
    %c0_i32_0 = arith.constant 0 : i32
    %c0_i32_1 = arith.constant 0 : i32
    return %c0_i32, %c0_i32_0 : i32, i32
  }
  func.func @transform_3(%arg0: i32) -> (i32, i32) {
    %c0_i32 = arith.constant 0 : i32
    %c0_i32_0 = arith.constant 0 : i32
    %c0_i32_1 = arith.constant 0 : i32
    return %c0_i32, %c0_i32_0 : i32, i32
  }
  func.func @transform_4(%arg0: i32) -> (i32, i32) {
    %c0_i32 = arith.constant 0 : i32
    %c0_i32_0 = arith.constant 0 : i32
    %c0_i32_1 = arith.constant 0 : i32
    return %c0_i32, %c0_i32_0 : i32, i32
  }
  func.func @transform_5(%arg0: i32) -> (i32, i32) {
    %c0_i32 = arith.constant 0 : i32
    %c0_i32_0 = arith.constant 0 : i32
    %c0_i32_1 = arith.constant 0 : i32
    return %c0_i32, %c0_i32_0 : i32, i32
  }
  func.func @transform_6(%arg0: i32) -> (i32, i32) {
    %c0_i32 = arith.constant 0 : i32
    %c0_i32_0 = arith.constant 0 : i32
    %c0_i32_1 = arith.constant 0 : i32
    return %c0_i32, %c0_i32_0 : i32, i32
  }
  func.func @transform_7(%arg0: i32) -> (i32, i32) {
    %c0_i32 = arith.constant 0 : i32
    %c0_i32_0 = arith.constant 0 : i32
    %c0_i32_1 = arith.constant 0 : i32
    return %c0_i32, %c0_i32_0 : i32, i32
  }
  func.func @transform_8(%arg0: i32) -> (i32, i32) {
    %c0_i32 = arith.constant 0 : i32
    %c0_i32_0 = arith.constant 0 : i32
    %c0_i32_1 = arith.constant 0 : i32
    return %c0_i32, %c0_i32_0 : i32, i32
  }
  func.func @transform_9(%arg0: i32) -> (i32, i32) {
    %c0_i32 = arith.constant 0 : i32
    %c0_i32_0 = arith.constant 0 : i32
    return %arg0, %c0_i32 : i32, i32
  }
}

</mosaic_0001>

<bundles_post_ra>
// kernel: tpu_custom_call.1
= control target key start
LH: loop header
LB: loop body
LE: loop exit
PB: predicated region body
PF: predicated region fallthrough
CT: control target
= control target key end

     0   :  { %s1971_s0 = inlined_call_operand.hbm [shape: bf16[256,128], index: 0, kind: input, shape index: {}]   ;;  %s1972_s1 = inlined_call_operand.hbm [shape: bf16[8,128], index: 1, kind: input, shape index: {}]   ;;  %s1973_s2 = inlined_call_operand.hbm [shape: bf16[128,128], index: 2, kind: input, shape index: {}]   ;;  %s1974_s3 = inlined_call_operand.vmem [shape: f32[1,128], index: 3, kind: input, shape index: {}]   ;;  %s1975_s4 = inlined_call_operand.hbm [shape: bf16[128,128], index: 4, kind: input, shape index: {}]   ;;  %s1976_s5 = inlined_call_operand.vmem [shape: f32[1,128], index: 5, kind: input, shape index: {}]   ;;  %s1977_s6 = inlined_call_operand.hbm [shape: bf16[128,128], index: 6, kind: input, shape index: {}]   ;;  %s1978_s7 = inlined_call_operand.hbm [shape: bf16[128,128], index: 7, kind: input, shape index: {}]   ;;  %s1979_s8 = inlined_call_operand.vmem [shape: f32[1,128], index: 8, kind: input, shape index: {}]   ;;  %s1980_s9 = inlined_call_operand.hbm [shape: f32[16,128], index: 9, kind: output, shape index: {}]  }
   0x1   :  { %1983 = sst [smem:[#allocation19_spill]] %s1972_s1 }
   0x2   :  { %1984 = sst [smem:[#allocation20_spill]] %s1973_s2 }
   0x3   :  { %1985 = sst [smem:[#allocation21_spill]] %s1975_s4 }
   0x4   :  { %14 = vsyncpa [#allocation3], 0 }
   0x5   :  { %16 = vsyncpa [#allocation3 + $0x1], 0 }
   0x6   :  { %17 = vsyncpa [#allocation6], 0 }
   0x7   :  { %18 = vsyncpa [#allocation9], 0 }
   0x8   :  { %19 = vsyncpa [#allocation12], 0 }
   0x9   :  { %20 = vsyncpa [#allocation4], 0 }
   0xa   :  { %22 = vsyncpa [#allocation4 + $0x1], 0  ;;  %s1763_s30 = smov 0   ;;  %s1765_s10 = smov 0  }
   0xb   :  { %s1767_s11 = smov 0   ;;  %s1769_s12 = smov 0  }
   0xc LB: > { %s1986_s1 = sld [smem:[#allocation19_spill]]  ;;  %s1787_s16 = sadd.s32 4294967295, %s1704_s12   ;;  %s1704_s12 = sphi %s1769_s12, %s2001_s12   ;;  %s1700_s11 = sphi %s1767_s11, %s2000_s11   ;;  %s1696_s10 = sphi %s1765_s10, %s1999_s10   ;;  %s1692_s30 = sphi %s1763_s30, %s1998_s30  }
   0xd   : > { %p1105_p0 = scmp.ge.s32.totalorder %s1704_s12, 1  ;;  %p49_p1 = scmp.eq.s32.totalorder %s1787_s16, 0 }
   0xe   : > { %p253_p2 = scmp.lt.s32.totalorder %s1704_s12, 3  ;;  %s1706_s18 = smov [#allocation5]  }
   0xf   : > { %s267_s19 = sshll.u32 %s1706_s18, 4  ;;  %s1988_s4 = sld [smem:[#allocation21_spill]]  ;;  %s268_s19 = int_to_ptr.vmem [resolvable:$true] %s267_s19 }
  0x10   : > { %p1792_p3 = pnand %p1105_p0, %p253_p2  ;;  %s1990_s2 = sld [smem:[#allocation20_spill]] }
  0x11   : > { %s1707_s27 = smov [#allocation8]   ;;  %s1981_s29 = smov 64  }
  0x12   : > { %s265_s15 = sshll.u32 %s1986_s1, 4  ;;  %p1368_p5 = pneg %p1792_p3  ;;  %s266_s15 = int_to_ptr.hbm [resolvable:$true] %s265_s15 }
  0x13   : > { %s295_s28 = sshll.u32 %s1707_s27, 4  ;;  %s1982_s13 = smov 4   ;;  %s296_s28 = int_to_ptr.vmem [resolvable:$true] %s295_s28 }
  0x14   : > { %p1804_p6 = pnand %p1368_p5, %p49_p1  ;;  %s310_s20 = sshll.u32 %s1977_s6, 4  ;;  %s311_s20 = int_to_ptr.hbm [resolvable:$true] %s310_s20 }
  0x15   : > { %s293_s22 = sshll.u32 %s1988_s4, 4  ;;  %s1710_s21 = smov [#allocation7]   ;;  %s294_s22 = int_to_ptr.hbm [resolvable:$true] %s293_s22 }
  0x16   : > { %s276_s26 = sshll.u32 %s1990_s2, 4  ;;  %s278_s24 = sshll.u32 %s1710_s21, 4  ;;  %s277_s26 = int_to_ptr.hbm [resolvable:$true] %s276_s26  ;;  %s279_s24 = int_to_ptr.vmem [resolvable:$true] %s278_s24 }
  0x17   : > { %1371 = dma.hbm_to_vmem [thread:$0]  (!%p1804_p6), %s266_s15, 64, %s268_s19, [#allocation6]  }
  0x18   : > { %1377 = dma.hbm_to_vmem [thread:$0]  (!%p1804_p6), %s294_s22, 1024, %s296_s28, [#allocation9], %s1981_s29, %s1981_s29, %s1982_s13  }
  0x19   : > { %1374 = dma.hbm_to_vmem [thread:$0]  (!%p1804_p6), %s277_s26, 1024, %s279_s24, [#allocation6], %s1981_s29, %s1981_s29, %s1982_s13  }
  0x1a   : > { %s1711_s15 = smov [#allocation10]   ;;  %s324_s27 = sshll.u32 %s1978_s7, 4  ;;  %s325_s27 = int_to_ptr.hbm [resolvable:$true] %s324_s27 }
  0x1b   : > { %s312_s19 = sshll.u32 %s1711_s15, 4  ;;  %s1712_s26 = smov [#allocation11]   ;;  %s313_s19 = int_to_ptr.vmem [resolvable:$true] %s312_s19 }
  0x1c   : > { %1380 = dma.hbm_to_vmem [thread:$0]  (!%p1804_p6), %s311_s20, 1024, %s313_s19, [#allocation9], %s1981_s29, %s1981_s29, %s1982_s13  }
  0x1d   : > { %s326_s28 = sshll.u32 %s1712_s26, 4  ;;  %s1104_s14 = sadd.s32 4294967294, %s1704_s12   ;;  %s327_s28 = int_to_ptr.vmem [resolvable:$true] %s326_s28 }
  0x1e   : > { %1383 = dma.hbm_to_vmem [thread:$0]  (!%p1804_p6), %s325_s27, 1024, %s327_s28, [#allocation12], %s1981_s29, %s1981_s29, %s1982_s13  }
  0x1f   : > { %s1841_s18 = sadd.s32 1, %s1704_s12   ;;  %s35_s21 = sadd.s32 1, %s1700_s11 }
  0x20   : > { %s32_s24 = ssub.s32 %s1704_s12, %s1841_s18  ;;  %p42_p7 = scmp.ne.s32.totalorder %s1700_s11, %s1696_s10 }
  0x21   : > { %p33_p8 = scmp.eq.s32.totalorder %s32_s24, 0  ;;  %p43_p9 = scmp.eq.s32.totalorder %s1704_s12, 0 }
  0x22   : > { %p48_p10 = scmp.ne.s32.totalorder %s1696_s10, %s1692_s30  ;;  %p240_p11 = scmp.eq.s32.totalorder %s1787_s16, 1 }
  0x23   : > { %s1853_s20 = scalar_select %p33_p8, %s1700_s11, %s35_s21  }
  0x24   : > { %p1857_p12 = por %p49_p1, %p48_p10  ;;  %p1861_p13 = por %p240_p11, %p42_p7 }
  0x25   : > { %p246_p0 = scmp.eq.s32.totalorder %s1104_s14, 1  ;;  %p44_p2 = por %p43_p9, %p42_p7 }
  0x26   : > { %s343_s19 = sand.u32 1, %s1700_s11   ;;  %p1397_p6 = scmp.lt.s32.totalorder %s1704_s12, 2 }
  0x27   : > { %p1866_p5 = por %p246_p0, %p48_p10  ;;  %s1112_s25 = sshll.u32 %s343_s19, 6 }
  0x28   : > { %s1287_s27 = sshll.u32 %s1704_s12, 6  ;;  %s347_s29 = scalar_lea.vmem [#allocation2], %s1112_s25 }
  0x29   : > { %s352_s21 = scalar_lea.hbm %s1971_s0, %s1287_s27  ;;  %s355_s13 = sshll.u32 %s347_s29, 4  ;;  %s356_s13 = int_to_ptr.vmem [resolvable:$true] %s355_s13 }
  0x2a   : > { %s353_s24 = sshll.u32 %s352_s21, 4  ;;  %p1875_p8 = pnand %p1397_p6, %p44_p2  ;;  %s354_s24 = int_to_ptr.hbm [resolvable:$true] %s353_s24 }
  0x2b   : > { %s344_s1 = scalar_lea.sflag [#allocation3], %s343_s19  ;;  %s1596_s2 = sshra.s32 %s354_s24, 4  ;;  %s1597_s2 = int_to_ptr.hbm [resolvable:$true] %s1596_s2 }
  0x2c   : > { %s1598_s4 = scalar_lea.hbm %s1597_s2, 64  ;;  %p1600_p9 = pneg %p1875_p8 }
  0x2d   : > { %p1599_p7 = scmp.ne.s32.totalorder %s1597_s2, %s1598_s4  ;;  %s1603_s29 = scalar_lea.hbm %s1971_s0, 128 }
  0x2e   : > { %p1604_p0 = scmp.lt.s32.totalorder %s1597_s2, %s1971_s0  ;;  %p1605_p2 = scmp.lt.s32.totalorder %s1603_s29, %s1598_s4 }
  0x2f   : > { %p1601_p10 = pnand %p1600_p9, %p1599_p7 }
  0x30   : > { %p1606_p6 = por %p1605_p2, %p1604_p0 }
  0x31   : > { %p1602_p11 = pneg %p1601_p10 }
  0x33   : > { %p1607_p4 = pnand %p1606_p6, %p1602_p11 }
  0x35   : > { %1610 = shalt.err (!%p1607_p4)
}
  0x36   : > { %s1995_s19 = smov 4   ;;  %s1996_s21 = smov 64  }
  0x37   : > { %1387 = dma.hbm_to_vmem [thread:$0]  (!%p1875_p8), %s354_s24, 1024, %s356_s13, %s344_s1, %s1996_s21, %s1996_s21, %s1995_s19  }
  0x38   : > { %367 = sbr.rel (%p1792_p3) target bundleno = 757 (0x2f5), region = 56  ;;  %s1895_s27 = sand.u32 (!%p1792_p3), 1, %s1696_s10  }
  0x39   : > { %s1116_s2 = sshll.u32 (!%p1792_p3), %s1895_s27, 6  ;;  %s370_s4 = scalar_lea.sflag (!%p1792_p3), [#allocation3], %s1895_s27 }
  0x3a   : > { %s1899_s26 = scalar_lea.vmem (!%p1792_p3), [#allocation2], %s1116_s2 }
  0x3d   : > { %1671 = dma.done.wait (%p1857_p12), %s370_s4, 1024  }
  0x3e   : > { %1673 = vsyncadd (%p1857_p12), %s370_s4, 4294966272 }
  0x3f   : > { %1675 = dma.done.wait (%p49_p1), [#allocation6], 1088  }
  0x40   : > { %1677 = vsyncadd (%p49_p1), [#allocation6], 4294966208 }
  0x41   : > { %1679 = dma.done.wait (%p49_p1), [#allocation9], 2048  }
  0x42   : > { %1681 = vsyncadd (%p49_p1), [#allocation9], 4294965248 }
  0x43   : > { %1683 = dma.done.wait (%p49_p1), [#allocation12], 1024  }
  0x44   : > { %1685 = vsyncadd (%p49_p1), [#allocation12], 4294966272  ;;  %v1303_v0 = vld [vmem:[#allocation7 + $0x38] sm:$0xff]  ;;  %v1302_v1 = vld [vmem:[#allocation7 + $0x30] sm:$0xff]  ;;  %s1122_s24 = sshll.u32 %s1895_s27, 3  ;;  %s1284_s14 = sshll.u32 %s1787_s16, 3 }
  0x45   : > { %567 = vmatpush.bf16.msra.mxu0 %v1303_v0  ;;  %1328 = vmatpush.bf16.msra.mxu2 %v1303_v0  ;;  %v1301_v2 = vld [vmem:[#allocation7 + $0x28] sm:$0xff]  ;;  %v1300_v3 = vld [vmem:[#allocation7 + $0x20] sm:$0xff]  ;;  %v1299_v4 = vld [vmem:[#allocation7 + $0x18] sm:$0xff]  ;;  %s981_s28 = scalar_lea.hbm %s1980_s9, %s1284_s14  ;;  %s433_s2 = scalar_lea.vmem [#allocation13], %s1122_s24 }
  0x46   : > { %v1298_v5 = vld [vmem:[#allocation7 + $0x10] sm:$0xff]  ;;  %v1297_v6 = vld [vmem:[#allocation7 + $0x8] sm:$0xff]  ;;  %v1296_v7 = vld [vmem:[#allocation7] sm:$0xff]  ;;  %s983_s4 = sshll.u32 %s433_s2, 4  ;;  %s971_s1 = scalar_lea.sflag [#allocation4], %s1895_s27  ;;  %s984_s4 = int_to_ptr.vmem [resolvable:$true] %s983_s4 }
  0x47   : > { %v1288_v8 = vld [vmem:[%s1899_s26] sm:$0xff]  ;;  %v1294_v9 = vld [vmem:[%s1899_s26 + $0x30] sm:$0xff]  ;;  %v1289_v10 = vld [vmem:[%s1899_s26 + $0x8] sm:$0xff]  ;;  %s1646_s14 = scalar_lea.hbm %s1980_s9, 16 }
  0x48   : > { %v1295_v11 = vld [vmem:[%s1899_s26 + $0x38] sm:$0xff]  ;;  %v1290_v12 = vld [vmem:[%s1899_s26 + $0x10] sm:$0xff]  ;;  %v1308_v17 = vld [vmem:[#allocation8 + $0x20] sm:$0xff] }
  0x49   : > { %568 = vmatpush.bf16.msra.mxu0 %v1302_v1  ;;  %1329 = vmatpush.bf16.msra.mxu2 %v1302_v1  ;;  %v1291_v13 = vld [vmem:[%s1899_s26 + $0x18] sm:$0xff]  ;;  %v1309_v16 = vld [vmem:[#allocation8 + $0x28] sm:$0xff]  ;;  %v1292_v18 = vld [vmem:[%s1899_s26 + $0x20] sm:$0xff] }
  0x4a   : > { %v1311_v14 = vld [vmem:[#allocation8 + $0x38] sm:$0xff]  ;;  %v1310_v15 = vld [vmem:[#allocation8 + $0x30] sm:$0xff]  ;;  %v1293_v19 = vld [vmem:[%s1899_s26 + $0x28] sm:$0xff]  ;;  %s985_s26 = sshll.u32 %s981_s28, 4  ;;  %s986_s26 = int_to_ptr.hbm [resolvable:$true] %s985_s26 }
  0x4b   : > { %708 = vmatpush.bf16.msra.mxu1 %v1311_v14  ;;  %1336 = vmatpush.bf16.msra.mxu3 %v1311_v14  ;;  %v1307_v20 = vld [vmem:[#allocation8 + $0x18] sm:$0xff]  ;;  %v1306_v21 = vld [vmem:[#allocation8 + $0x10] sm:$0xff]  ;;  %v1305_v22 = vld [vmem:[#allocation8 + $0x8] sm:$0xff]  ;;  %s1640_s16 = sshra.s32 %s986_s26, 4  ;;  %s1641_s16 = int_to_ptr.hbm [resolvable:$true] %s1640_s16 }
  0x4c   : > { %v1304_v23 = vld [vmem:[#allocation8] sm:$0xff]  ;;  %v1443_v25 = vld [vmem:[%s1974_s3] ss:$0 sm:$0xff]  ;;  %s1642_s17 = scalar_lea.hbm %s1641_s16, 8  ;;  %p1647_p12 = scmp.lt.s32.totalorder %s1641_s16, %s1980_s9 }
  0x4d   : > { %569 = vmatpush.bf16.msra.mxu0 %v1301_v2  ;;  %1330 = vmatpush.bf16.msra.mxu2 %v1301_v2  ;;  %p1643_p1 = scmp.ne.s32.totalorder %s1641_s16, %s1642_s17  ;;  %p1648_p8 = scmp.lt.s32.totalorder %s1646_s14, %s1642_s17 }
  0x4f   : > { %709 = vmatpush.bf16.msra.mxu1 %v1310_v15  ;;  %1337 = vmatpush.bf16.msra.mxu3 %v1310_v15  ;;  %p1644_p3 = pnand %p1643_p1, %p1861_p13  ;;  %p1649_p7 = por %p1648_p8, %p1647_p12 }
  0x51   : > { %570 = vmatpush.bf16.msra.mxu0 %v1300_v3  ;;  %1331 = vmatpush.bf16.msra.mxu2 %v1300_v3  ;;  %p1645_p4 = pneg %p1644_p3 }
  0x53   : > { %710 = vmatpush.bf16.msra.mxu1 %v1309_v16  ;;  %1338 = vmatpush.bf16.msra.mxu3 %v1309_v16  ;;  %p1650_p9 = pnand %p1649_p7, %p1645_p4 }
  0x55   : > { %571 = vmatpush.bf16.msra.mxu0 %v1299_v4  ;;  %1332 = vmatpush.bf16.msra.mxu2 %v1299_v4 }
  0x57   : > { %711 = vmatpush.bf16.msra.mxu1 %v1308_v17  ;;  %1339 = vmatpush.bf16.msra.mxu3 %v1308_v17 }
  0x59   : > { %572 = vmatpush.bf16.msra.mxu0 %v1298_v5  ;;  %1333 = vmatpush.bf16.msra.mxu2 %v1298_v5 }
  0x5b   : > { %712 = vmatpush.bf16.msra.mxu1 %v1307_v20  ;;  %1340 = vmatpush.bf16.msra.mxu3 %v1307_v20 }
  0x5d   : > { %573 = vmatpush.bf16.msra.mxu0 %v1297_v6  ;;  %1334 = vmatpush.bf16.msra.mxu2 %v1297_v6 }
  0x5f   : > { %713 = vmatpush.bf16.msra.mxu1 %v1306_v21  ;;  %1341 = vmatpush.bf16.msra.mxu3 %v1306_v21 }
  0x61   : > { %574 = vmatpush.bf16.msra.mxu0 %v1296_v7  ;;  %1335 = vmatpush.bf16.msra.mxu2 %v1296_v7 }
  0x63   : > { %714 = vmatpush.bf16.msra.mxu1 %v1305_v22  ;;  %1342 = vmatpush.bf16.msra.mxu3 %v1305_v22 }
  0x64   : > { %575 = vmatmul.bf16.vlgmr.msra.gmra.mxu0 %v1288_v8  ;;  %605 = vmatmul.bf16.vlgmr.msra.gmra.mxu2 %v1294_v9 }
  0x67   : > { %715 = vmatpush.bf16.msra.mxu1 %v1304_v23  ;;  %1343 = vmatpush.bf16.msra.mxu3 %v1304_v23 }
  0x74   : > { %580 = vmatmul.bf16.gmra.mxu0 %v1289_v10  ;;  %610 = vmatmul.bf16.gmra.mxu2 %v1295_v11 }
  0x84   : > { %585 = vmatmul.bf16.gmra.mxu0 %v1290_v12 }
  0x94   : > { %590 = vmatmul.bf16.gmra.mxu0 %v1291_v13 }
  0xa4   : > { %595 = vmatmul.bf16.gmra.mxu0 %v1292_v18  ;;  %v1444_v18 = vld [vmem:[%s1976_s5] ss:$0 sm:$0xff] }
  0xb4   : > { %600 = vmatmul.bf16.gmra.mxu0 %v1293_v19 }
  0xe1   : > { %v576_v24 = vpop.f32.mrf.mxu0 }
  0xe2   : > { %v577_v27 = vadd.f32 %v1443_v25, %v576_v24 }
  0xe4   : > { %v616_v30 = vmax.f32 %v577_v27, 0.0 }
  0xe7   : > { %v606_v26 = vpop.f32.mrf.mxu2 }
  0xe8   : > { %v607_v32 = vadd.f32 %v1443_v25, %v606_v26 }
  0xe9   : > { %v578_v28 = vpop.f32.mrf.mxu0 }
  0xea   : > { %v579_v29 = vadd.f32 %v1443_v25, %v578_v28  ;;  %v628_v35 = vmax.f32 %v607_v32, 0.0 }
  0xec   : > { %v617_v31 = vmax.f32 %v579_v29, 0.0 }
  0xee   : > { %v632_v33 = vpack.c.bf16 %v617_v31, %v616_v30 }
  0xef   : > { %v608_v34 = vpop.f32.mrf.mxu2 }
  0xf0   : > { %716 = vmatmul.bf16.vlgmr.msra.gmra.mxu1 %v632_v33  ;;  %v609_v36 = vadd.f32 %v1443_v25, %v608_v34 }
  0xf1   : > { %v581_v37 = vpop.f32.mrf.mxu0 }
  0xf2   : > { %v629_v38 = vmax.f32 %v609_v36, 0.0  ;;  %v582_v41 = vadd.f32 %v1443_v25, %v581_v37 }
  0xf4   : > { %v638_v39 = vpack.c.bf16 %v629_v38, %v628_v35  ;;  %v618_v44 = vmax.f32 %v582_v41, 0.0 }
  0xf6   : > { %746 = vmatmul.bf16.vlgmr.msra.gmra.mxu3 %v638_v39 }
  0xf7   : > { %v611_v40 = vpop.f32.mrf.mxu2 }
  0xf8   : > { %v612_v46 = vadd.f32 %v1443_v25, %v611_v40 }
  0xf9   : > { %v583_v42 = vpop.f32.mrf.mxu0 }
  0xfa   : > { %v584_v43 = vadd.f32 %v1443_v25, %v583_v42  ;;  %v630_v49 = vmax.f32 %v612_v46, 0.0 }
  0xfc   : > { %v619_v45 = vmax.f32 %v584_v43, 0.0 }
  0xfe   : > { %v633_v47 = vpack.c.bf16 %v619_v45, %v618_v44 }
  0xff   : > { %v613_v48 = vpop.f32.mrf.mxu2 }
 0x100   : > { %721 = vmatmul.bf16.gmra.mxu1 %v633_v47  ;;  %v614_v50 = vadd.f32 %v1443_v25, %v613_v48 }
 0x101   : > { %v586_v51 = vpop.f32.mrf.mxu0 }
 0x102   : > { %v631_v52 = vmax.f32 %v614_v50, 0.0  ;;  %v587_v54 = vadd.f32 %v1443_v25, %v586_v51 }
 0x104   : > { %v639_v53 = vpack.c.bf16 %v631_v52, %v630_v49  ;;  %v620_v57 = vmax.f32 %v587_v54, 0.0  ;;  %v781_v52 = vld [vmem:[#allocation5] sm:$0xf] }
 0x106   : > { %751 = vmatmul.bf16.gmra.mxu3 %v639_v53  ;;  %782 = vmatpush.bf16.msrb.mxu2 %v639_v53 }
 0x109   : > { %v588_v55 = vpop.f32.mrf.mxu0 }
 0x10a   : > { %v589_v56 = vadd.f32 %v1443_v25, %v588_v55  ;;  %783 = vmatpush.bf16.msrb.mxu2 %v638_v39 }
 0x10c   : > { %v621_v58 = vmax.f32 %v589_v56, 0.0  ;;  %v1327_v56 = vld [vmem:[#allocation11 + $0x38] sm:$0xff] }
 0x10e   : > { %v634_v59 = vpack.c.bf16 %v621_v58, %v620_v57 }
 0x110   : > { %726 = vmatmul.bf16.gmra.mxu1 %v634_v59 }
 0x111   : > { %v591_v60 = vpop.f32.mrf.mxu0 }
 0x112   : > { %v592_v61 = vadd.f32 %v1443_v25, %v591_v60 }
 0x114   : > { %v622_v0 = vmax.f32 %v592_v61, 0.0 }
 0x119   : > { %v593_v62 = vpop.f32.mrf.mxu0 }
 0x11a   : > { %v594_v63 = vadd.f32 %v1443_v25, %v593_v62  ;;  %v1326_v62 = vld [vmem:[#allocation11 + $0x30] sm:$0xff] }
 0x11c   : > { %v623_v1 = vmax.f32 %v594_v63, 0.0 }
 0x11e   : > { %v635_v2 = vpack.c.bf16 %v623_v1, %v622_v0 }
 0x120   : > { %731 = vmatmul.bf16.gmra.mxu1 %v635_v2 }
 0x121   : > { %v596_v3 = vpop.f32.mrf.mxu0 }
 0x122   : > { %v597_v4 = vadd.f32 %v1443_v25, %v596_v3 }
 0x124   : > { %v624_v7 = vmax.f32 %v597_v4, 0.0  ;;  %v1325_v4 = vld [vmem:[#allocation11 + $0x28] sm:$0xff] }
 0x129   : > { %v598_v5 = vpop.f32.mrf.mxu0 }
 0x12a   : > { %v599_v6 = vadd.f32 %v1443_v25, %v598_v5 }
 0x12c   : > { %v625_v8 = vmax.f32 %v599_v6, 0.0 }
 0x12e   : > { %v636_v9 = vpack.c.bf16 %v625_v8, %v624_v7 }
 0x130   : > { %736 = vmatmul.bf16.gmra.mxu1 %v636_v9 }
 0x131   : > { %v601_v10 = vpop.f32.mrf.mxu0 }
 0x132   : > { %v602_v11 = vadd.f32 %v1443_v25, %v601_v10  ;;  %v1324_v10 = vld [vmem:[#allocation11 + $0x20] sm:$0xff] }
 0x134   : > { %v626_v14 = vmax.f32 %v602_v11, 0.0 }
 0x139   : > { %v603_v12 = vpop.f32.mrf.mxu0 }
 0x13a   : > { %v604_v13 = vadd.f32 %v1443_v25, %v603_v12 }
 0x13c   : > { %v627_v15 = vmax.f32 %v604_v13, 0.0 }
 0x13e   : > { %v637_v16 = vpack.c.bf16 %v627_v15, %v626_v14  ;;  %v1323_v14 = vld [vmem:[#allocation11 + $0x18] sm:$0xff] }
 0x140   : > { %741 = vmatmul.bf16.gmra.mxu1 %v637_v16  ;;  %784 = vmatpush.bf16.msrb.mxu2 %v637_v16  ;;  %v1322_v16 = vld [vmem:[#allocation11 + $0x10] sm:$0xff] }
 0x144   : > { %785 = vmatpush.bf16.msrb.mxu2 %v636_v9 }
 0x148   : > { %786 = vmatpush.bf16.msrb.mxu2 %v635_v2 }
 0x14c   : > { %787 = vmatpush.bf16.msrb.mxu2 %v634_v59 }
 0x150   : > { %788 = vmatpush.bf16.msrb.mxu2 %v633_v47 }
 0x154   : > { %789 = vmatpush.bf16.msrb.mxu2 %v632_v33 }
 0x157   : > { %790 = vmatmul.bf16.vlgmr.msrb.gmra.mxu2 %v781_v52 }
 0x158   : > { %890 = vmatpush.bf16.msra.mxu2 %v1327_v56 }
 0x15c   : > { %891 = vmatpush.bf16.msra.mxu2 %v1326_v62 }
 0x160   : > { %892 = vmatpush.bf16.msra.mxu2 %v1325_v4 }
 0x164   : > { %893 = vmatpush.bf16.msra.mxu2 %v1324_v10 }
 0x168   : > { %894 = vmatpush.bf16.msra.mxu2 %v1323_v14 }
 0x16c   : > { %895 = vmatpush.bf16.msra.mxu2 %v1322_v16 }
 0x16d   : > { %v717_v17 = vpop.f32.mrf.mxu1 }
 0x16e   : > { %v718_v19 = vadd.f32 %v1444_v18, %v717_v17  ;;  %v1319_v17 = vld [vmem:[#allocation10 + $0x38] sm:$0xff] }
 0x170   : > { %v757_v22 = vmax.f32 %v718_v19, 0.0  ;;  %v1317_v19 = vld [vmem:[#allocation10 + $0x28] sm:$0xff] }
 0x175   : > { %v719_v20 = vpop.f32.mrf.mxu1 }
 0x176   : > { %v720_v21 = vadd.f32 %v1444_v18, %v719_v20  ;;  %v1316_v20 = vld [vmem:[#allocation10 + $0x20] sm:$0xff] }
 0x178   : > { %v758_v23 = vmax.f32 %v720_v21, 0.0  ;;  %v1315_v21 = vld [vmem:[#allocation10 + $0x18] sm:$0xff] }
 0x179   : > { %v747_v24 = vpop.f32.mrf.mxu3 }
 0x17a   : > { %v1931_v25 = vpack.c.bf16 %v758_v23, %v757_v22  ;;  %v748_v37 = vadd.f32 %v1444_v18, %v747_v24  ;;  %v1314_v22 = vld [vmem:[#allocation10 + $0x10] sm:$0xff]  ;;  %v1313_v23 = vld [vmem:[#allocation10 + $0x8] sm:$0xff]  ;;  %v1312_v24 = vld [vmem:[#allocation10] sm:$0xff] }
 0x17c   : > { %v769_v42 = vmax.f32 %v748_v37, 0.0 }
 0x17d   : > { %v722_v26 = vpop.f32.mrf.mxu1 }
 0x17e   : > { %v723_v28 = vadd.f32 %v1444_v18, %v722_v26  ;;  %v1321_v26 = vld [vmem:[#allocation11 + $0x8] sm:$0xff] }
 0x17f   : > { %896 = vmatpush.bf16.msra.mxu2 %v1321_v26 }
 0x180   : > { %v759_v31 = vmax.f32 %v723_v28, 0.0  ;;  %v1320_v28 = vld [vmem:[#allocation11] sm:$0xff] }
 0x181   : > { %v749_v27 = vpop.f32.mrf.mxu3 }
 0x182   : > { %v750_v38 = vadd.f32 %v1444_v18, %v749_v27 }
 0x183   : > { %897 = vmatpush.bf16.msra.mxu2 %v1320_v28 }
 0x184   : > { %v770_v43 = vmax.f32 %v750_v38, 0.0 }
 0x185   : > { %v724_v29 = vpop.f32.mrf.mxu1 }
 0x186   : > { %v725_v30 = vadd.f32 %v1444_v18, %v724_v29  ;;  %v779_v47 = vpack.c.bf16 %v770_v43, %v769_v42 }
 0x188   : > { %v760_v32 = vmax.f32 %v725_v30, 0.0 }
 0x189   : > { %v752_v33 = vpop.f32.mrf.mxu3 }
 0x18a   : > { %v774_v34 = vpack.c.bf16 %v760_v32, %v759_v31  ;;  %v753_v36 = vadd.f32 %v1444_v18, %v752_v33 }
 0x18c   : > { %v771_v40 = vmax.f32 %v753_v36, 0.0 }
 0x18d   : > { %v727_v35 = vpop.f32.mrf.mxu1 }
 0x18e   : > { %v728_v8 = vadd.f32 %v1444_v18, %v727_v35  ;;  %v1445_v35 = vld [vmem:[%s1979_s8] ss:$0 sm:$0xff] }
 0x190   : > { %v761_v13 = vmax.f32 %v728_v8, 0.0 }
 0x191   : > { %v754_v39 = vpop.f32.mrf.mxu3 }
 0x192   : > { %v755_v41 = vadd.f32 %v1444_v18, %v754_v39 }
 0x194   : > { %v772_v44 = vmax.f32 %v755_v41, 0.0 }
 0x195   : > { %v729_v45 = vpop.f32.mrf.mxu1 }
 0x196   : > { %v780_v46 = vpack.c.bf16 %v772_v44, %v771_v40  ;;  %v730_v5 = vadd.f32 %v1444_v18, %v729_v45 }
 0x198   : > { %795 = vmatpush.bf16.msrb.mxu3 %v780_v46  ;;  %v762_v11 = vmax.f32 %v730_v5, 0.0 }
 0x19a   : > { %v775_v15 = vpack.c.bf16 %v762_v11, %v761_v13 }
 0x19c   : > { %796 = vmatpush.bf16.msrb.mxu3 %v779_v47 }
 0x19d   : > { %v732_v48 = vpop.f32.mrf.mxu1 }
 0x19e   : > { %v733_v2 = vadd.f32 %v1444_v18, %v732_v48 }
 0x1a0   : > { %v763_v9 = vmax.f32 %v733_v2, 0.0 }
 0x1a5   : > { %v734_v49 = vpop.f32.mrf.mxu1 }
 0x1a6   : > { %v735_v63 = vadd.f32 %v1444_v18, %v734_v49 }
 0x1a8   : > { %v764_v6 = vmax.f32 %v735_v63, 0.0 }
 0x1aa   : > { %v776_v12 = vpack.c.bf16 %v764_v6, %v763_v9 }
 0x1ad   : > { %v737_v50 = vpop.f32.mrf.mxu1 }
 0x1ae   : > { %v738_v59 = vadd.f32 %v1444_v18, %v737_v50 }
 0x1b0   : > { %v765_v3 = vmax.f32 %v738_v59, 0.0 }
 0x1b5   : > { %v739_v51 = vpop.f32.mrf.mxu1 }
 0x1b6   : > { %v740_v57 = vadd.f32 %v1444_v18, %v739_v51 }
 0x1b8   : > { %v766_v0 = vmax.f32 %v740_v57, 0.0 }
 0x1ba   : > { %v777_v7 = vpack.c.bf16 %v766_v0, %v765_v3 }
 0x1bd   : > { %v742_v53 = vpop.f32.mrf.mxu1 }
 0x1be   : > { %v743_v54 = vadd.f32 %v1444_v18, %v742_v53 }
 0x1c0   : > { %v767_v60 = vmax.f32 %v743_v54, 0.0 }
 0x1c5   : > { %v744_v55 = vpop.f32.mrf.mxu1 }
 0x1c6   : > { %v745_v58 = vadd.f32 %v1444_v18, %v744_v55  ;;  %v1318_v18 = vld [vmem:[#allocation10 + $0x30] sm:$0xff] }
 0x1c8   : > { %v768_v61 = vmax.f32 %v745_v58, 0.0 }
 0x1ca   : > { %v778_v1 = vpack.c.bf16 %v768_v61, %v767_v60 }
 0x1cc   : > { %797 = vmatpush.bf16.msrb.mxu3 %v778_v1 }
 0x1d0   : > { %798 = vmatpush.bf16.msrb.mxu3 %v777_v7 }
 0x1d4   : > { %799 = vmatpush.bf16.msrb.mxu3 %v776_v12 }
 0x1d8   : > { %800 = vmatpush.bf16.msrb.mxu3 %v775_v15 }
 0x1dc   : > { %801 = vmatpush.bf16.msrb.mxu3 %v774_v34 }
 0x1e0   : > { %802 = vmatpush.bf16.msrb.mxu3 %v1931_v25  ;;  %v791_v25 = vpop.f32.mrf.mxu2 }
 0x1e1   : > { %v808_v27 = vpack.c.bf16 %v791_v25, %v791_v25 }
 0x1e3   : > { %803 = vmatmul.bf16.vlgmr.msrb.gmra.mxu3 %v781_v52 }
 0x1e4   : > { %951 = vmatpush.bf16.msra.mxu3 %v1319_v17 }
 0x1e8   : > { %952 = vmatpush.bf16.msra.mxu3 %v1318_v18  ;;  %v793_v29 = vpop.f32.mrf.mxu2 }
 0x1ec   : > { %953 = vmatpush.bf16.msra.mxu3 %v1317_v19 }
 0x1f0   : > { %954 = vmatpush.bf16.msra.mxu3 %v1316_v20 }
 0x1f4   : > { %955 = vmatpush.bf16.msra.mxu3 %v1315_v21 }
 0x1f8   : > { %956 = vmatpush.bf16.msra.mxu3 %v1314_v22 }
 0x1fc   : > { %957 = vmatpush.bf16.msra.mxu3 %v1313_v23 }
 0x200   : > { %958 = vmatpush.bf16.msra.mxu3 %v1312_v24 }
 0x203   : > { %959 = vmatmul.bf16.vlgmr.msra.gmra.mxu3 %v808_v27 }
 0x266   : > { %v804_v30 = vpop.f32.mrf.mxu3 }
 0x267   : > { %v825_v31 = vpack.c.bf16 %v804_v30, %v804_v30 }
 0x269   : > { %898 = vmatmul.bf16.vlgmr.msra.gmra.mxu2 %v825_v31 }
 0x26e   : > { %v806_v32 = vpop.f32.mrf.mxu3 }
 0x286   : > { %v960_v33 = vpop.f32.mrf.mxu3 }
 0x28e   : > { %v962_v34 = vpop.f32.mrf.mxu3 }
 0x2ec   : > { %v899_v36 = vpop.f32.mrf.mxu2 }
 0x2ed   : > { %v961_v37 = vadd.f32 %v960_v33, %v899_v36 }
 0x2ef   : > { %v968_v38 = vadd.f32 %v1445_v35, %v961_v37 }
 0x2f1   : > { %969 = vst [vmem:[%s433_s2] sm:$0xff] %v968_v38 }
 0x2f2   : > { %1653 = shalt.err (!%p1650_p9)
}
 0x2f3   : > { %1366 = dma.vmem_to_hbm [thread:$0]  (%p1861_p13), %s984_s4, 128, %s986_s26, %s971_s1  }
 0x2f4   : > { %v901_v39 = vpop.f32.mrf.mxu2 }
 0x2f5 PF: > { %s997_s27 = sand.u32 1, %s1692_s30   ;;  %p1997_p10 = scmp.ge.s32.totalorder %s1704_s12, 2 }
 0x2f6   : > { %s998_s25 = scalar_lea.sflag [#allocation4], %s997_s27 }
 0x2f7   : > { %p1389_p11 = pnand %p1997_p10, %p1866_p5 }
 0x2f9   : > { %p1390_p0 = pneg %p1389_p11 }
 0x2fb   : > { %1687 = dma.done.wait (%p1390_p0), %s998_s25, 128  }
 0x2fc   : > { %1689 = vsyncadd (%p1390_p0), %s998_s25, 4294967168  ;;  %p25_p2 = scmp.ge.s32.totalorder %s1841_s18, 4   ;;  %s1998_s30 = smov %s1696_s10 }
 0x2fd   : > { %s1999_s10 = smov %s1700_s11  ;;  %s2000_s11 = smov %s1853_s20 }
 0x2fe   : > { %s2001_s12 = smov %s1841_s18  ;;  %27 = sbr.rel (!%p25_p2) target bundleno = 12 (0xc), region = 121 }
 0x303   :  { %1004 = vsyncpa [#allocation3], 1 }
 0x304   :  { %1006 = vsyncpa [#allocation3 + $0x1], 1 }
 0x305   :  { %1007 = vsyncpa [#allocation6], 1 }
 0x306   :  { %1008 = vsyncpa [#allocation9], 1 }
 0x307   :  { %1009 = vsyncpa [#allocation12], 1 }
 0x308   :  { %1010 = vsyncpa [#allocation4], 1 }
 0x309   :  { %1012 = vsyncpa [#allocation4 + $0x1], 1 }

</bundles_post_ra>
